<compile_context>
chip_gen: v7x
topology: tpu7x:2x2x1
jax: 0.10.0
libtpu: 0.0.40
codegen_flags: <defaults>
</compile_context>

<pallas_src>
import functools

import jax
import jax.numpy as jnp
from jax.experimental import pallas as pl
from jax.experimental.pallas import tpu as pltpu

NUM_MODES = 6
HIDDEN = 256  # hard-coded by the PyTorch module


def _round_up(n, m):
    return ((n + m - 1) // m) * m


# ---------------------------------------------------------------------------
# Fused kernel: proj + relayout + loc/pi heads, single invocation, no grid
# ---------------------------------------------------------------------------
def _decoder_kernel(
    x_ref,      # (B, D)                input (already cast to compute dtype)
    wmm_ref,    # (D, 6D)               multimodal_proj weight
    w1_ref,     # (D, 2*HIDDEN)         [wl1 | wp1]
    w2_ref,     # (2*HIDDEN, 2D)        blockdiag(wl2, wp2)
    w3_ref,     # (2D, pad)             [wl3_pad ; wp3_pad]  (lane-dense slab)
    bias_ref,   # (4, BW) f32           rows: b_mm | [bl1|bp1] | [bl2|bp2] | b3_slab
    out_ref,    # (6*BP, pad) f32       output slab
    x6_ref,     # (6*BP, D) f32         scratch: mode-batched proj activations
    *, b, bp, d, pad, num_modes,
):
    cdt = wmm_ref.dtype  # compute dtype fed to the MXU (f32 or bf16)

    bias = bias_ref[...]
    b_mm = bias[0:1, :num_modes * d]
    b1 = bias[1:2, :2 * HIDDEN]
    b2 = bias[2:3, :2 * d]
    b3 = bias[3:4, :pad]

    # (1) multimodal projection: all 6 modes in ONE matmul  -> (B, 6D)
    proj = jnp.dot(x_ref[...], wmm_ref[...],
                   preferred_element_type=jnp.float32) + b_mm

    # (2) relayout modes from lanes to sublanes: (B, 6D) -> (6*BP, D)
    #     row m*BP + b  holds  proj[b, m*D:(m+1)*D]
    x6_ref[...] = jnp.zeros_like(x6_ref)
    for m in range(num_modes):
        x6_ref[m * bp:m * bp + b, :] = proj[:, m * d:(m + 1) * d]
    x6 = x6_ref[...].astype(cdt)

    # (3) fused head layer 1 (loc | pi): (rows, 2*HIDDEN)
    h1 = jnp.maximum(
        jnp.dot(x6, w1_ref[...], preferred_element_type=jnp.float32) + b1, 0.0)

    # (4) block-diagonal layer 2: (rows, 2D) = [h2_loc | h2_pi]
    h2 = jnp.maximum(
        jnp.dot(h1.astype(cdt), w2_ref[...],
                preferred_element_type=jnp.float32) + b2, 0.0)

    # (5) stacked layer 3 -> lane-dense output slab
    #     lanes [0:2T) = loc, lane [2T] = pi, rest zeros.
    out_ref[...] = jnp.dot(h2.astype(cdt), w3_ref[...],
                           preferred_element_type=jnp.float32) + b3


# ---------------------------------------------------------------------------
# One-time parameter packing (layout only; zeros never change the math)
# ---------------------------------------------------------------------------
def pack_params(params, embed_dim, future_steps, weight_dtype=jnp.float32):
    D = embed_dim
    H = HIDDEN
    T2 = future_steps * 2
    pad = max(128, _round_up(T2 + 1, 128))
    bw = max(2 * H, pad, NUM_MODES * D)  # bias slab width (lane-dense)

    # proj weight kept as the original (D, 6D) single matmul
    wmm = params["w_mm"]

    # fused layer 1:  [wl1 | wp1]  -> (D, 2H)
    w1 = jnp.concatenate([params["wl1"], params["wp1"]], axis=1)

    # block-diag layer 2:  blockdiag(wl2, wp2)  -> (2H, 2D)
    w2 = (jnp.zeros((2 * H, 2 * D), jnp.float32)
          .at[:H, :D].set(params["wl2"])
          .at[H:, D:].set(params["wp2"]))

    # stacked layer 3: rows [0:D]=loc branch (lanes [0:T2]),
    #                  rows [D:2D]=pi branch (lane T2)  -> (2D, pad)
    w3 = (jnp.zeros((2 * D, pad), jnp.float32)
          .at[:D, :T2].set(params["wl3"])
          .at[D:, T2:T2 + 1].set(params["wp3"]))

    # all biases in one lane-dense f32 array (kept f32 even in bf16 mode,
    # since they are added to f32 accumulators)
    biases = jnp.zeros((4, bw), jnp.float32)
    biases = biases.at[0, :NUM_MODES * D].set(params["b_mm"][0])
    biases = (biases.at[1, :H].set(params["bl1"][0])
                    .at[1, H:2 * H].set(params["bp1"][0]))
    biases = (biases.at[2, :D].set(params["bl2"][0])
                    .at[2, D:2 * D].set(params["bp2"][0]))
    biases = (biases.at[3, :T2].set(params["bl3"][0])
                    .at[3, T2:T2 + 1].set(params["bp3"][0]))

    cast = lambda a: a.astype(weight_dtype)
    return {
        "wmm": cast(wmm), "w1": cast(w1), "w2": cast(w2), "w3": cast(w3),
        "biases": biases, "pad": pad,
    }


# ---------------------------------------------------------------------------
# Forward wrapper
# ---------------------------------------------------------------------------
def multimodal_decoder_forward(x, packed, embed_dim, future_steps):
    """Equivalent of MultimodalDecoder.forward.

    x: (B, embed_dim) float32
    returns: loc (B, 6, future_steps, 2) f32, pi (B, 6) f32
    """
    B = x.shape[0]
    D = embed_dim
    T2 = future_steps * 2
    pad = packed["pad"]
    BP = _round_up(max(B, 1), 8)      # pad batch rows to the sublane tile
    rows = NUM_MODES * BP

    x = x.astype(packed["wmm"].dtype)
    args = (x, packed["wmm"], packed["w1"], packed["w2"], packed["w3"],
            packed["biases"])

    kernel = functools.partial(
        _decoder_kernel, b=B, bp=BP, d=D, pad=pad, num_modes=NUM_MODES)

    # advisory cost estimate: helps XLA schedule around this launch-bound call
    flops = (2 * B * D * NUM_MODES * D
             + 2 * NUM_MODES * B * (D * 2 * HIDDEN
                                    + 2 * HIDDEN * 2 * D
                                    + 2 * D * pad))
    bytes_accessed = (sum(int(a.size) * a.dtype.itemsize for a in args)
                      + rows * pad * 4)
    ce = pl.CostEstimate(flops=flops, transcendentals=0,
                         bytes_accessed=bytes_accessed)

    slab = pl.pallas_call(
        kernel,
        in_specs=[pl.BlockSpec(memory_space=pltpu.MemorySpace.VMEM)
                  for _ in args],
        out_specs=pl.BlockSpec(memory_space=pltpu.MemorySpace.VMEM),
        out_shape=jax.ShapeDtypeStruct((rows, pad), jnp.float32),
        scratch_shapes=[pltpu.VMEM((rows, D), jnp.float32)],
        cost_estimate=ce,
    )(*args)

    # un-pack the lane-dense slab: row m*BP + b  ->  (batch b, mode m)
    slab = slab.reshape(NUM_MODES, BP, pad)[:, :B, :]   # (6, B, pad)
    slab = slab.transpose(1, 0, 2)                      # (B, 6, pad)
    loc = slab[:, :, :T2].reshape(B, NUM_MODES, future_steps, 2)
    pi = slab[:, :, T2]
    return loc, pi


# ---------------------------------------------------------------------------
# Deterministic parameter init (shapes follow the PyTorch module)
# ---------------------------------------------------------------------------
def init_params(key, embed_dim, future_steps):
    ks = jax.random.split(key, 8)
    s = 0.02

    def lin(kw, in_f, out_f):
        # stored as (in, out) == PyTorch weight.T
        w = s * jax.random.normal(kw, (in_f, out_f), jnp.float32)
        b = jnp.zeros((1, out_f), jnp.float32)
        return w, b

    p = {}
    p["w_mm"], p["b_mm"] = lin(ks[0], embed_dim, NUM_MODES * embed_dim)
    p["wl1"], p["bl1"] = lin(ks[1], embed_dim, HIDDEN)
    p["wl2"], p["bl2"] = lin(ks[2], HIDDEN, embed_dim)
    p["wl3"], p["bl3"] = lin(ks[3], embed_dim, future_steps * 2)
    p["wp1"], p["bp1"] = lin(ks[4], embed_dim, HIDDEN)
    p["wp2"], p["bp2"] = lin(ks[5], HIDDEN, embed_dim)
    p["wp3"], p["bp3"] = lin(ks[6], embed_dim, 1)
    # deterministic non-zero biases so they are actually exercised
    for name in list(p.keys()):
        if name.startswith("b"):
            b = p[name]
            p[name] = b + 0.01 * jnp.arange(b.shape[-1],
                                            dtype=jnp.float32)[None, :]
    return p


# ---------------------------------------------------------------------------
# Pure-JAX reference (uses the raw, unpacked params)
# ---------------------------------------------------------------------------
def reference_forward(x, params, embed_dim, future_steps):
    B = x.shape[0]
    proj = x @ params["w_mm"] + params["b_mm"]
    x6 = proj.reshape(B * NUM_MODES, embed_dim)

    h = jnp.maximum(x6 @ params["wl1"] + params["bl1"], 0.0)
    h = jnp.maximum(h @ params["wl2"] + params["bl2"], 0.0)
    loc = (h @ params["wl3"] + params["bl3"]).reshape(
        B, NUM_MODES, future_steps, 2)

    g = jnp.maximum(x6 @ params["wp1"] + params["bp1"], 0.0)
    g = jnp.maximum(g @ params["wp2"] + params["bp2"], 0.0)
    pi = (g @ params["wp3"] + params["bp3"]).reshape(B, NUM_MODES)
    return loc, pi


if __name__ == "__main__":
    embed_dim = 32
    future_steps = 8
    batch = 4

    key = jax.random.PRNGKey(0)
    kx, kp = jax.random.split(key)
    x = jax.random.normal(kx, (batch, embed_dim), jnp.float32)
    params = init_params(kp, embed_dim, future_steps)

    loc_ref, pi_ref = reference_forward(x, params, embed_dim, future_steps)

    # --- f32 path (numerically identical packing) ---
    packed = pack_params(params, embed_dim, future_steps)
    loc, pi = multimodal_decoder_forward(x, packed, embed_dim, future_steps)
    jax.block_until_ready((loc, pi))
    assert loc.shape == (batch, NUM_MODES, future_steps, 2)
    assert pi.shape == (batch, NUM_MODES)
    assert jnp.allclose(loc, loc_ref, atol=1e-5, rtol=1e-5)
    assert jnp.allclose(pi, pi_ref, atol=1e-5, rtol=1e-5)

    # --- bf16 weight/activation path (v6e/v7x bf16-native MXU), f32 accum ---
    packed_bf16 = pack_params(params, embed_dim, future_steps,
                              weight_dtype=jnp.bfloat16)
    loc_b, pi_b = multimodal_decoder_forward(x, packed_bf16, embed_dim,
                                             future_steps)
    jax.block_until_ready((loc_b, pi_b))
    assert jnp.allclose(loc_b, loc_ref, atol=5e-2, rtol=5e-2)
    assert jnp.allclose(pi_b, pi_ref, atol=5e-2, rtol=5e-2)

    print("KERNEL_OK")
</pallas_src>

<mosaic_0001>
module attributes {stable_mosaic.version = 11 : i64} {
  func.func @_decoder_kernel(%arg0: memref<4x32xf32, #tpu.memory_space<vmem>>, %arg1: memref<32x192xf32, #tpu.memory_space<vmem>>, %arg2: memref<32x512xf32, #tpu.memory_space<vmem>>, %arg3: memref<512x64xf32, #tpu.memory_space<vmem>>, %arg4: memref<64x128xf32, #tpu.memory_space<vmem>>, %arg5: memref<4x512xf32, #tpu.memory_space<vmem>>, %arg6: memref<48x128xf32, #tpu.memory_space<vmem>>, %arg7: memref<48x32xf32, #tpu.memory_space<vmem>>) attributes {dimension_semantics = [], scalar_prefetch = 0 : i64, scratch_operands = 1 : i64, tpu.core_type = #tpu.core_type<tc>} {
    %c0 = arith.constant 0 : index
    %c0_0 = arith.constant 0 : index
    %0 = vector.load %arg5[%c0, %c0_0] : memref<4x512xf32, #tpu.memory_space<vmem>>, vector<4x512xf32>
    %1 = vector.extract_strided_slice %0 {offsets = [0, 0], sizes = [1, 192], strides = [1, 1]} : vector<4x512xf32> to vector<1x192xf32>
    %2 = vector.extract_strided_slice %0 {offsets = [1, 0], sizes = [1, 512], strides = [1, 1]} : vector<4x512xf32> to vector<1x512xf32>
    %3 = vector.extract_strided_slice %0 {offsets = [2, 0], sizes = [1, 64], strides = [1, 1]} : vector<4x512xf32> to vector<1x64xf32>
    %4 = vector.extract_strided_slice %0 {offsets = [3, 0], sizes = [1, 128], strides = [1, 1]} : vector<4x512xf32> to vector<1x128xf32>
    %c0_1 = arith.constant 0 : index
    %c0_2 = arith.constant 0 : index
    %5 = vector.load %arg0[%c0_1, %c0_2] : memref<4x32xf32, #tpu.memory_space<vmem>>, vector<4x32xf32>
    %c0_3 = arith.constant 0 : index
    %c0_4 = arith.constant 0 : index
    %6 = vector.load %arg1[%c0_3, %c0_4] : memref<32x192xf32, #tpu.memory_space<vmem>>, vector<32x192xf32>
    %cst = arith.constant dense<0.000000e+00> : vector<4x192xf32>
    %7 = tpu.matmul %5, %6, %cst {dimension_numbers = #tpu.dot_dimension_numbers<[1], [0], [0], [1], [0, 0, 1, 1], [], []>} : vector<4x32xf32>, vector<32x192xf32>, vector<4x192xf32> -> vector<4x192xf32>
    %8 = vector.broadcast %1 : vector<1x192xf32> to vector<4x192xf32>
    %9 = arith.addf %7, %8 : vector<4x192xf32>
    %cst_5 = arith.constant 0.000000e+00 : f32
    %10 = vector.broadcast %cst_5 : f32 to vector<48x32xf32>
    %c0_6 = arith.constant 0 : index
    %c0_7 = arith.constant 0 : index
    %11 = vector.load %arg7[%c0_6, %c0_7] : memref<48x32xf32, #tpu.memory_space<vmem>>, vector<48x32xf32>
    tpu.vector_store %arg7[%c0_6, %c0_7], %10 {strides = array<i32>} : memref<48x32xf32, #tpu.memory_space<vmem>>, vector<48x32xf32>,
    %12 = vector.extract_strided_slice %9 {offsets = [0, 0], sizes = [4, 32], strides = [1, 1]} : vector<4x192xf32> to vector<4x32xf32>
    %c0_8 = arith.constant 0 : index
    %c0_9 = arith.constant 0 : index
    %13 = vector.load %arg7[%c0_8, %c0_9] : memref<48x32xf32, #tpu.memory_space<vmem>>, vector<4x32xf32>
    tpu.vector_store %arg7[%c0_8, %c0_9], %12 {strides = array<i32>} : memref<48x32xf32, #tpu.memory_space<vmem>>, vector<4x32xf32>,
    %14 = vector.extract_strided_slice %9 {offsets = [0, 32], sizes = [4, 32], strides = [1, 1]} : vector<4x192xf32> to vector<4x32xf32>
    %c8 = arith.constant 8 : index
    %c0_10 = arith.constant 0 : index
    %15 = vector.load %arg7[%c8, %c0_10] : memref<48x32xf32, #tpu.memory_space<vmem>>, vector<4x32xf32>
    tpu.vector_store %arg7[%c8, %c0_10], %14 {strides = array<i32>} : memref<48x32xf32, #tpu.memory_space<vmem>>, vector<4x32xf32>,
    %16 = vector.extract_strided_slice %9 {offsets = [0, 64], sizes = [4, 32], strides = [1, 1]} : vector<4x192xf32> to vector<4x32xf32>
    %c16 = arith.constant 16 : index
    %c0_11 = arith.constant 0 : index
    %17 = vector.load %arg7[%c16, %c0_11] : memref<48x32xf32, #tpu.memory_space<vmem>>, vector<4x32xf32>
    tpu.vector_store %arg7[%c16, %c0_11], %16 {strides = array<i32>} : memref<48x32xf32, #tpu.memory_space<vmem>>, vector<4x32xf32>,
    %18 = vector.extract_strided_slice %9 {offsets = [0, 96], sizes = [4, 32], strides = [1, 1]} : vector<4x192xf32> to vector<4x32xf32>
    %c24 = arith.constant 24 : index
    %c0_12 = arith.constant 0 : index
    %19 = vector.load %arg7[%c24, %c0_12] : memref<48x32xf32, #tpu.memory_space<vmem>>, vector<4x32xf32>
    tpu.vector_store %arg7[%c24, %c0_12], %18 {strides = array<i32>} : memref<48x32xf32, #tpu.memory_space<vmem>>, vector<4x32xf32>,
    %20 = vector.extract_strided_slice %9 {offsets = [0, 128], sizes = [4, 32], strides = [1, 1]} : vector<4x192xf32> to vector<4x32xf32>
    %c32 = arith.constant 32 : index
    %c0_13 = arith.constant 0 : index
    %21 = vector.load %arg7[%c32, %c0_13] : memref<48x32xf32, #tpu.memory_space<vmem>>, vector<4x32xf32>
    tpu.vector_store %arg7[%c32, %c0_13], %20 {strides = array<i32>} : memref<48x32xf32, #tpu.memory_space<vmem>>, vector<4x32xf32>,
    %22 = vector.extract_strided_slice %9 {offsets = [0, 160], sizes = [4, 32], strides = [1, 1]} : vector<4x192xf32> to vector<4x32xf32>
    %c40 = arith.constant 40 : index
    %c0_14 = arith.constant 0 : index
    %23 = vector.load %arg7[%c40, %c0_14] : memref<48x32xf32, #tpu.memory_space<vmem>>, vector<4x32xf32>
    tpu.vector_store %arg7[%c40, %c0_14], %22 {strides = array<i32>} : memref<48x32xf32, #tpu.memory_space<vmem>>, vector<4x32xf32>,
    %c0_15 = arith.constant 0 : index
    %c0_16 = arith.constant 0 : index
    %24 = vector.load %arg7[%c0_15, %c0_16] : memref<48x32xf32, #tpu.memory_space<vmem>>, vector<48x32xf32>
    %c0_17 = arith.constant 0 : index
    %c0_18 = arith.constant 0 : index
    %25 = vector.load %arg2[%c0_17, %c0_18] : memref<32x512xf32, #tpu.memory_space<vmem>>, vector<32x512xf32>
    %cst_19 = arith.constant dense<0.000000e+00> : vector<48x512xf32>
    %26 = tpu.matmul %24, %25, %cst_19 {dimension_numbers = #tpu.dot_dimension_numbers<[1], [0], [0], [1], [0, 0, 1, 1], [], []>} : vector<48x32xf32>, vector<32x512xf32>, vector<48x512xf32> -> vector<48x512xf32>
    %27 = vector.broadcast %2 : vector<1x512xf32> to vector<48x512xf32>
    %28 = arith.addf %26, %27 : vector<48x512xf32>
    %cst_20 = arith.constant 0.000000e+00 : f32
    %29 = vector.broadcast %cst_20 : f32 to vector<48x512xf32>
    %30 = arith.maximumf %28, %29 : vector<48x512xf32>
    %c0_21 = arith.constant 0 : index
    %c0_22 = arith.constant 0 : index
    %31 = vector.load %arg3[%c0_21, %c0_22] : memref<512x64xf32, #tpu.memory_space<vmem>>, vector<512x64xf32>
    %cst_23 = arith.constant dense<0.000000e+00> : vector<48x64xf32>
    %32 = tpu.matmul %30, %31, %cst_23 {dimension_numbers = #tpu.dot_dimension_numbers<[1], [0], [0], [1], [0, 0, 1, 1], [], []>} : vector<48x512xf32>, vector<512x64xf32>, vector<48x64xf32> -> vector<48x64xf32>
    %33 = vector.broadcast %3 : vector<1x64xf32> to vector<48x64xf32>
    %34 = arith.addf %32, %33 : vector<48x64xf32>
    %cst_24 = arith.constant 0.000000e+00 : f32
    %35 = vector.broadcast %cst_24 : f32 to vector<48x64xf32>
    %36 = arith.maximumf %34, %35 : vector<48x64xf32>
    %c0_25 = arith.constant 0 : index
    %c0_26 = arith.constant 0 : index
    %37 = vector.load %arg4[%c0_25, %c0_26] : memref<64x128xf32, #tpu.memory_space<vmem>>, vector<64x128xf32>
    %cst_27 = arith.constant dense<0.000000e+00> : vector<48x128xf32>
    %38 = tpu.matmul %36, %37, %cst_27 {dimension_numbers = #tpu.dot_dimension_numbers<[1], [0], [0], [1], [0, 0, 1, 1], [], []>} : vector<48x64xf32>, vector<64x128xf32>, vector<48x128xf32> -> vector<48x128xf32>
    %39 = vector.broadcast %4 : vector<1x128xf32> to vector<48x128xf32>
    %40 = arith.addf %38, %39 : vector<48x128xf32>
    %c0_28 = arith.constant 0 : index
    %c0_29 = arith.constant 0 : index
    %41 = vector.load %arg6[%c0_28, %c0_29] : memref<48x128xf32, #tpu.memory_space<vmem>>, vector<48x128xf32>
    tpu.vector_store %arg6[%c0_28, %c0_29], %40 {strides = array<i32>} : memref<48x128xf32, #tpu.memory_space<vmem>>, vector<48x128xf32>,
    return
  }
}

</mosaic_0001>

<bundles_post_ra>
// kernel: tpu_custom_call.1
= control target key start
LH: loop header
LB: loop body
LE: loop exit
PB: predicated region body
PF: predicated region fallthrough
CT: control target
= control target key end

     0   :  { %vm54_vm0 = vcmask 261120   ;;  %v1164_v7 = vmov 0.0   ;;  %s1613_s0 = inlined_call_operand.vmem [shape: f32[4,32], index: 0, kind: input, shape index: {}]   ;;  %s1614_s1 = inlined_call_operand.vmem [shape: f32[32,192], index: 1, kind: input, shape index: {}]   ;;  %s1615_s2 = inlined_call_operand.vmem [shape: f32[32,512], index: 2, kind: input, shape index: {}]   ;;  %s1616_s3 = inlined_call_operand.vmem [shape: f32[512,64], index: 3, kind: input, shape index: {}]   ;;  %s1617_s4 = inlined_call_operand.vmem [shape: f32[64,128], index: 4, kind: input, shape index: {}]   ;;  %s1618_s5 = inlined_call_operand.vmem [shape: f32[4,512], index: 5, kind: input, shape index: {}]   ;;  %s1619_s6 = inlined_call_operand.hbm [shape: f32[48,128], index: 6, kind: output, shape index: {}]  }
   0x1   :  { %v28_v0 = vld [vmem:[%s1614_s1 + $0x8] sm:$0xff]  ;;  %v30_v1 = vld [vmem:[%s1614_s1 + $0x18] sm:$0xff]  ;;  %v27_v2 = vld [vmem:[%s1614_s1] sm:$0xff]  ;;  %122 = vmatprep.mubr.f32.mxu0 %v1164_v7  ;;  %129 = vst.msk [vmem:[#allocation2] sm:$0xff] %vm54_vm0, %v1164_v7  ;;  %297 = vmatprep.mubr.f32.mxu1 %v1164_v7 }
   0x2   :  { %v1029_v3 = vpack.c.bf16 %v30_v1, %v28_v0  ;;  %v29_v4 = vld [vmem:[%s1614_s1 + $0x10] sm:$0xff]  ;;  %v32_v5 = vld [vmem:[%s1614_s1 + $0x28] sm:$0xff]  ;;  %v34_v6 = vld [vmem:[%s1614_s1 + $0x38] sm:$0xff]  ;;  %130 = vst.msk [vmem:[#allocation2 + $0x8] sm:$0xff] %vm54_vm0, %v1164_v7 }
   0x3   :  { %131 = vst.msk [vmem:[#allocation2 + $0x10] sm:$0xff] %vm54_vm0, %v1164_v7  ;;  %132 = vst.msk [vmem:[#allocation2 + $0x18] sm:$0xff] %vm54_vm0, %v1164_v7  ;;  %v1031_v8 = vpack.c.bf16 %v29_v4, %v27_v2  ;;  %v1033_v9 = vpack.c.bf16 %v34_v6, %v32_v5  ;;  %v31_v10 = vld [vmem:[%s1614_s1 + $0x20] sm:$0xff]  ;;  %v33_v11 = vld [vmem:[%s1614_s1 + $0x30] sm:$0xff] }
   0x4   :  { %133 = vst.msk [vmem:[#allocation2 + $0x20] sm:$0xff] %vm54_vm0, %v1164_v7  ;;  %134 = vst.msk [vmem:[#allocation2 + $0x28] sm:$0xff] %vm54_vm0, %v1164_v7  ;;  %1030 = vmatprep.subr.bf16.mxu0 %v1029_v3 }
   0x5   :  { %11 = vsyncpa [#allocation4], 0  ;;  %1032 = vmatpush1.bf16.msra.mxu0 %v1031_v8  ;;  %v1035_v12 = vpack.c.bf16 %v33_v11, %v31_v10  ;;  %v26_v13 = vld [vmem:[%s1613_s0] sm:$0xf]  ;;  %v163_v14 = vld [vmem:[%s1615_s2 + $0x8] sm:$0xff]  ;;  %v36_v38 = vlaneseq  ;;  %vm135_vm1 = vcmask 257024  }
   0x6   :  { %1034 = vmatprep.subr.bf16.mxu0 %v1033_v9  ;;  %v167_v15 = vld [vmem:[%s1615_s2 + $0x28] sm:$0xff]  ;;  %v165_v16 = vld [vmem:[%s1615_s2 + $0x18] sm:$0xff]  ;;  %v162_v19 = vld [vmem:[%s1615_s2] sm:$0xff]  ;;  %s1166_s0 = smov 96   ;;  %s1167_s22 = smov 64   ;;  %vm735_vm2 = vcmask 523264  }
   0x7   :  { %v1037_v17 = vpack.c.bf16 %v167_v15, %v163_v14  ;;  %v169_v18 = vld [vmem:[%s1615_s2 + $0x38] sm:$0xff]  ;;  %v166_v20 = vld [vmem:[%s1615_s2 + $0x20] sm:$0xff]  ;;  %v164_v23 = vld [vmem:[%s1615_s2 + $0x10] sm:$0xff]  ;;  %v1297_v39 = vshrl.u32 %v36_v38, 7 }
   0x8   :  { %v1045_v21 = vpack.c.bf16 %v169_v18, %v165_v16  ;;  %v1039_v22 = vpack.c.bf16 %v166_v20, %v162_v19  ;;  %v168_v24 = vld [vmem:[%s1615_s2 + $0x30] sm:$0xff]  ;;  %v171_v26 = vld [vmem:[%s1615_s2 + $0x48] sm:$0xff]  ;;  %v173_v28 = vld [vmem:[%s1615_s2 + $0x58] sm:$0xff] }
   0x9   :  { %1036 = vmatpush1.bf16.msra.mxu0 %v1035_v12  ;;  %1038 = vmatprep.subr.bf16.mxu1 %v1037_v17  ;;  %v1047_v25 = vpack.c.bf16 %v168_v24, %v164_v23  ;;  %v175_v27 = vld [vmem:[%s1615_s2 + $0x68] sm:$0xff]  ;;  %v177_v30 = vld [vmem:[%s1615_s2 + $0x78] sm:$0xff]  ;;  %v170_v31 = vld [vmem:[%s1615_s2 + $0x40] sm:$0xff]  ;;  %v38_v40 = vsub.s32 0, %v1297_v39  ;;  %v42_v42 = vsub.s32 4, %v1297_v39 }
   0xa   :  { %1046 = vmatprep.subr.bf16.mxu0 %v1045_v21  ;;  %1040 = vmatpush1.bf16.msra.mxu1 %v1039_v22  ;;  %v1041_v29 = vpack.c.bf16 %v175_v27, %v171_v26  ;;  %v174_v32 = vld [vmem:[%s1615_s2 + $0x60] sm:$0xff]  ;;  %v1049_v33 = vpack.c.bf16 %v177_v30, %v173_v28  ;;  %v172_v35 = vld [vmem:[%s1615_s2 + $0x50] sm:$0xff]  ;;  %v476_v53 = vld [vmem:[%s1616_s3 + $0x88] sm:$0xff] }
   0xb   :  { %v1043_v34 = vpack.c.bf16 %v174_v32, %v170_v31  ;;  %v176_v36 = vld [vmem:[%s1615_s2 + $0x70] sm:$0xff]  ;;  %v1303_v41 = vld [vmem:[%s1618_s5] sm:$0xff]  ;;  %s1165_s2 = smov 32   ;;  %v508_v56 = vld [vmem:[%s1616_s3 + $0x188] sm:$0xff] }
   0xc   :  { %871 = vmatmul.mubr.msk.f32.vlgmr.msra.gmra.mrb[0].mxu0 %vm54_vm0, %v26_v13  ;;  %1042 = vmatprep.subr.bf16.mxu1 %v1041_v29  ;;  %v1051_v37 = vpack.c.bf16 %v176_v36, %v172_v35  ;;  %v39_v43 = vrot.slane %v1303_v41, %v38_v40  ;;  %v43_v44 = vrot.slane %v1303_v41, %v42_v42  ;;  %v475_v52 = vld [vmem:[%s1616_s3 + $0x80] sm:$0xff]  ;;  %v460_v58 = vld [vmem:[%s1616_s3 + $0x8] sm:$0xff]  ;;  %v477_v63 = vld [vmem:[%s1616_s3 + $0x90] sm:$0xff] }
   0xd   :  { %398 = vmatprep.mubr.f32.mxu0 %v1164_v7  ;;  %1048 = vmatpush1.bf16.msra.mxu0 %v1047_v25  ;;  %v507_v54 = vld [vmem:[%s1616_s3 + $0x180] sm:$0xff]  ;;  %v1053_v55 = vpack.c.bf16 %v476_v53, %v475_v52  ;;  %v492_v62 = vld [vmem:[%s1616_s3 + $0x108] sm:$0xff]  ;;  %v478_v1 = vld [vmem:[%s1616_s3 + $0x98] sm:$0xff] }
   0xe   :  { %1050 = vmatprep.subr.bf16.mxu0 %v1049_v33  ;;  %1044 = vmatpush1.bf16.msra.mxu1 %v1043_v34  ;;  %v49_v45 = vrot.slane %v39_v43, %v38_v40  ;;  %v53_v46 = vrot.slane %v43_v44, %v38_v40  ;;  %v459_v57 = vld [vmem:[%s1616_s3] sm:$0xff]  ;;  %v1085_v59 = vpack.c.bf16 %v508_v56, %v507_v54  ;;  %v509_v2 = vld [vmem:[%s1616_s3 + $0x190] sm:$0xff]  ;;  %v510_v3 = vld [vmem:[%s1616_s3 + $0x198] sm:$0xff] }
   0xf   :  { %v1055_v60 = vpack.c.bf16 %v460_v58, %v459_v57  ;;  %v491_v61 = vld [vmem:[%s1616_s3 + $0x100] sm:$0xff]  ;;  %1054 = vmatprep.subr.bf16.mxu1 %v1053_v55  ;;  %v1057_v4 = vpack.c.bf16 %v478_v1, %v477_v63  ;;  %v1089_v5 = vpack.c.bf16 %v510_v3, %v509_v2  ;;  %v461_v6 = vld [vmem:[%s1616_s3 + $0x10] sm:$0xff]  ;;  %v462_v8 = vld [vmem:[%s1616_s3 + $0x18] sm:$0xff] }
  0x10   :  { %v1087_v0 = vpack.c.bf16 %v492_v62, %v491_v61  ;;  %v493_v9 = vld [vmem:[%s1616_s3 + $0x110] sm:$0xff]  ;;  %v1059_v10 = vpack.c.bf16 %v462_v8, %v461_v6  ;;  %v494_v11 = vld [vmem:[%s1616_s3 + $0x118] sm:$0xff]  ;;  %v479_v12 = vld [vmem:[%s1616_s3 + $0xa0] sm:$0xff] }
  0x11   :  { %1052 = vmatpush1.bf16.msra.mxu0 %v1051_v37  ;;  %v480_v13 = vld [vmem:[%s1616_s3 + $0xa8] sm:$0xff]  ;;  %v1091_v14 = vpack.c.bf16 %v494_v11, %v493_v9  ;;  %v511_v16 = vld [vmem:[%s1616_s3 + $0x1a0] sm:$0xff]  ;;  %v481_v24 = vld [vmem:[%s1616_s3 + $0xb0] sm:$0xff] }
  0x12   :  { %1086 = vmatprep.subr.bf16.mxu0 %v1085_v59  ;;  %v1061_v15 = vpack.c.bf16 %v480_v13, %v479_v12  ;;  %v512_v17 = vld [vmem:[%s1616_s3 + $0x1a8] sm:$0xff]  ;;  %v463_v18 = vld [vmem:[%s1616_s3 + $0x20] sm:$0xff]  ;;  %v482_v25 = vld [vmem:[%s1616_s3 + $0xb8] sm:$0xff] }
  0x13   :  { %v1093_v19 = vpack.c.bf16 %v512_v17, %v511_v16  ;;  %v464_v20 = vld [vmem:[%s1616_s3 + $0x28] sm:$0xff]  ;;  %v495_v21 = vld [vmem:[%s1616_s3 + $0x120] sm:$0xff]  ;;  %v513_v26 = vld [vmem:[%s1616_s3 + $0x1b0] sm:$0xff]  ;;  %v1065_v28 = vpack.c.bf16 %v482_v25, %v481_v24 }
  0x14   :  { %v496_v22 = vld [vmem:[%s1616_s3 + $0x128] sm:$0xff]  ;;  %v1063_v23 = vpack.c.bf16 %v464_v20, %v463_v18  ;;  %v514_v29 = vld [vmem:[%s1616_s3 + $0x1b8] sm:$0xff]  ;;  %v465_v30 = vld [vmem:[%s1616_s3 + $0x30] sm:$0xff] }
  0x15   :  { %v1095_v27 = vpack.c.bf16 %v496_v22, %v495_v21  ;;  %v466_v31 = vld [vmem:[%s1616_s3 + $0x38] sm:$0xff]  ;;  %v1097_v32 = vpack.c.bf16 %v514_v29, %v513_v26  ;;  %v497_v33 = vld [vmem:[%s1616_s3 + $0x130] sm:$0xff]  ;;  %v483_v35 = vld [vmem:[%s1616_s3 + $0xc0] sm:$0xff] }
  0x16   :  { %v498_v34 = vld [vmem:[%s1616_s3 + $0x138] sm:$0xff]  ;;  %v484_v36 = vld [vmem:[%s1616_s3 + $0xc8] sm:$0xff]  ;;  %v515_v37 = vld [vmem:[%s1616_s3 + $0x1c0] sm:$0xff]  ;;  %v1067_v40 = vpack.c.bf16 %v466_v31, %v465_v30 }
  0x17   :  { %v516_v38 = vld [vmem:[%s1616_s3 + $0x1c8] sm:$0xff]  ;;  %v1099_v42 = vpack.c.bf16 %v498_v34, %v497_v33  ;;  %v1069_v43 = vpack.c.bf16 %v484_v36, %v483_v35  ;;  %v467_v44 = vld [vmem:[%s1616_s3 + $0x40] sm:$0xff]  ;;  %v518_v52 = vld [vmem:[%s1616_s3 + $0x1d8] sm:$0xff]  ;;  %v181_v33 = vsub.s32 1, %v1297_v39  ;;  %v185_v35 = vsub.s32 5, %v1297_v39 }
  0x18   :  { %v469_v56 = vld [vmem:[%s1616_s3 + $0x50] sm:$0xff]  ;;  %v470_v57 = vld [vmem:[%s1616_s3 + $0x58] sm:$0xff]  ;;  %v487_v61 = vld [vmem:[%s1616_s3 + $0xe0] sm:$0xff] }
  0x19   :  { %v501_v58 = vld [vmem:[%s1616_s3 + $0x150] sm:$0xff]  ;;  %v488_v62 = vld [vmem:[%s1616_s3 + $0xe8] sm:$0xff]  ;;  %v519_v63 = vld [vmem:[%s1616_s3 + $0x1e0] sm:$0xff]  ;;  %v1075_v1 = vpack.c.bf16 %v470_v57, %v469_v56  ;;  %v182_v36 = vrot.slane %v1303_v41, %v181_v33 }
  0x1a   :  { %v1077_v3 = vpack.c.bf16 %v488_v62, %v487_v61  ;;  %v472_v6 = vld [vmem:[%s1616_s3 + $0x68] sm:$0xff]  ;;  %v503_v8 = vld [vmem:[%s1616_s3 + $0x160] sm:$0xff]  ;;  %v489_v12 = vld [vmem:[%s1616_s3 + $0xf0] sm:$0xff] }
  0x1b   :  { %v490_v13 = vld [vmem:[%s1616_s3 + $0xf8] sm:$0xff]  ;;  %v473_v17 = vld [vmem:[%s1616_s3 + $0x70] sm:$0xff]  ;;  %v25_v34 = vld [vmem:[%s1618_s5 + $0x8] sm:$0xff] }
  0x1c   :  { %v522_v16 = vld [vmem:[%s1616_s3 + $0x1f8] sm:$0xff]  ;;  %v505_v21 = vld [vmem:[%s1616_s3 + $0x170] sm:$0xff]  ;;  %v723_v57 = vld [vmem:[%s1617_s4] sm:$0xff] }
  0x1d   :  { %v474_v18 = vld [vmem:[%s1616_s3 + $0x78] sm:$0xff] }
  0x1e   :  { %v1083_v20 = vpack.c.bf16 %v474_v18, %v473_v17  ;;  %v506_v22 = vld [vmem:[%s1616_s3 + $0x178] sm:$0xff] }
  0x1f   :  { %v726_v61 = vld [vmem:[%s1617_s4 + $0x18] sm:$0xff] }
  0xdf   :  { %v124_v47 = vpop.f32.mrb[0].mxu0 }
  0xe0   :  { %v125_v48 = vadd.f32 %v124_v47, %v49_v45  ;;  %v126_v49 = vpop.f32.mrb[1].mxu0  ;;  %v468_v45 = vld [vmem:[%s1616_s3 + $0x48] sm:$0xff]  ;;  %v1101_v47 = vpack.c.bf16 %v516_v38, %v515_v37  ;;  %v190_v37 = vrot.slane %v25_v34, %v181_v33  ;;  %v186_v38 = vrot.slane %v1303_v41, %v185_v35 }
  0xe1   :  { %v127_v50 = vadd.f32 %v126_v49, %v53_v46  ;;  %v499_v46 = vld [vmem:[%s1616_s3 + $0x140] sm:$0xff]  ;;  %v485_v49 = vld [vmem:[%s1616_s3 + $0xd0] sm:$0xff]  ;;  %v1071_v53 = vpack.c.bf16 %v468_v45, %v467_v44 }
  0xe2   :  { %136 = vst.msk [vmem:[#allocation2] sm:$0xf] %vm135_vm1, %v125_v48  ;;  %146 = vrot.lane.b32.xlu1 %v125_v48, %s1165_s2  ;;  %138 = vrot.lane.b32.xlu0 %v125_v48, %s1166_s0 }
  0xe3   :  { %150 = vst.msk [vmem:[#allocation2 + $0x20] sm:$0xf] %vm135_vm1, %v127_v50 }
  0xe6   :  { %152 = vrot.lane.b32.xlu1 %v127_v50, %s1166_s0  ;;  %142 = vrot.lane.b32.xlu0 %v125_v48, %s1167_s22  ;;  %v500_v48 = vld [vmem:[%s1616_s3 + $0x148] sm:$0xff]  ;;  %v486_v50 = vld [vmem:[%s1616_s3 + $0xd8] sm:$0xff] }
  0xe7   :  { %v1103_v54 = vpack.c.bf16 %v500_v48, %v499_v46  ;;  %v1073_v55 = vpack.c.bf16 %v486_v50, %v485_v49 }
  0xe9   :  { %v156_v51 = vld [vmem:[#allocation2] sm:$0xff] }
  0xea   :  { %872 = vmatmul.mubr.msk.f32.vlgmr.msra.gmra.mrb[0].mxu1 %vm54_vm0, %v156_v51  ;;  %878 = vmatmul.mubr.msk.f32.vlgmr.msra.gmra.mrb[2].mxu0 %vm54_vm0, %v156_v51  ;;  %v517_v51 = vld [vmem:[%s1616_s3 + $0x1d0] sm:$0xff]  ;;  %v160_v31 = vld [vmem:[#allocation2 + $0x20] sm:$0xff] }
  0xeb   :  { %303 = vmatprep.mubr.f32.mxu1 %v1164_v7  ;;  %404 = vmatprep.mubr.f32.mxu0 %v1164_v7  ;;  %v1105_v59 = vpack.c.bf16 %v518_v52, %v517_v51 }
  0xec   :  { %1056 = vmatpush3.bf16.msra.mxu1 %v1055_v60  ;;  %1088 = vmatpush3.bf16.msra.mxu0 %v1087_v0  ;;  %v502_v60 = vld [vmem:[%s1616_s3 + $0x158] sm:$0xff]  ;;  %v520_v0 = vld [vmem:[%s1616_s3 + $0x1e8] sm:$0xff] }
  0xed   :  { %1058 = vmatprep.subr.bf16.mxu1 %v1057_v4  ;;  %1090 = vmatprep.subr.bf16.mxu0 %v1089_v5  ;;  %v1107_v2 = vpack.c.bf16 %v502_v60, %v501_v58  ;;  %v1109_v4 = vpack.c.bf16 %v520_v0, %v519_v63  ;;  %v471_v5 = vld [vmem:[%s1616_s3 + $0x60] sm:$0xff]  ;;  %v724_v58 = vld [vmem:[%s1617_s4 + $0x8] sm:$0xff] }
  0xee   :  { %v1079_v9 = vpack.c.bf16 %v472_v6, %v471_v5  ;;  %v1117_v60 = vpack.c.bf16 %v724_v58, %v723_v57 }
  0xf0   :  { %1060 = vmatpush3.bf16.msra.mxu1 %v1059_v10  ;;  %1092 = vmatpush3.bf16.msra.mxu0 %v1091_v14  ;;  %v504_v10 = vld [vmem:[%s1616_s3 + $0x168] sm:$0xff]  ;;  %v521_v14 = vld [vmem:[%s1616_s3 + $0x1f0] sm:$0xff] }
  0xf1   :  { %1062 = vmatprep.subr.bf16.mxu1 %v1061_v15  ;;  %1094 = vmatprep.subr.bf16.mxu0 %v1093_v19  ;;  %v1111_v11 = vpack.c.bf16 %v504_v10, %v503_v8  ;;  %v1081_v15 = vpack.c.bf16 %v490_v13, %v489_v12  ;;  %v1113_v19 = vpack.c.bf16 %v522_v16, %v521_v14 }
  0xf4   :  { %1064 = vmatpush3.bf16.msra.mxu1 %v1063_v23  ;;  %1096 = vmatpush3.bf16.msra.mxu0 %v1095_v27  ;;  %v1115_v23 = vpack.c.bf16 %v506_v22, %v505_v21 }
  0xf5   :  { %1066 = vmatprep.subr.bf16.mxu1 %v1065_v28  ;;  %1098 = vmatprep.subr.bf16.mxu0 %v1097_v32 }
  0xf8   :  { %1068 = vmatpush3.bf16.msra.mxu1 %v1067_v40  ;;  %1100 = vmatpush3.bf16.msra.mxu0 %v1099_v42  ;;  %v194_v40 = vrot.slane %v25_v34, %v185_v35  ;;  %v1537_v42 = vrot.slane %v190_v37, %v181_v33 }
  0xf9   :  { %1070 = vmatprep.subr.bf16.mxu1 %v1069_v43  ;;  %1102 = vmatprep.subr.bf16.mxu0 %v1101_v47  ;;  %v1539_v43 = vrot.slane %v186_v38, %v181_v33 }
  0xfa   :  { %v1541_v44 = vrot.slane %v194_v40, %v181_v33 }
  0xfc   :  { %1072 = vmatpush3.bf16.msra.mxu1 %v1071_v53  ;;  %1104 = vmatpush3.bf16.msra.mxu0 %v1103_v54 }
  0xfd   :  { %1074 = vmatprep.subr.bf16.mxu1 %v1073_v55  ;;  %1106 = vmatprep.subr.bf16.mxu0 %v1105_v59  ;;  %v725_v59 = vld [vmem:[%s1617_s4 + $0x10] sm:$0xff] }
  0xfe   :  { %v1121_v62 = vpack.c.bf16 %v726_v61, %v725_v59 }
 0x100   :  { %1076 = vmatpush3.bf16.msra.mxu1 %v1075_v1  ;;  %1108 = vmatpush3.bf16.msra.mxu0 %v1107_v2 }
 0x101   :  { %1078 = vmatprep.subr.bf16.mxu1 %v1077_v3  ;;  %1110 = vmatprep.subr.bf16.mxu0 %v1109_v4 }
 0x104   :  { %1080 = vmatpush3.bf16.msra.mxu1 %v1079_v9  ;;  %1112 = vmatpush3.bf16.msra.mxu0 %v1111_v11 }
 0x105   :  { %1082 = vmatprep.subr.bf16.mxu1 %v1081_v15  ;;  %1114 = vmatprep.subr.bf16.mxu0 %v1113_v19 }
 0x108   :  { %1084 = vmatpush3.bf16.msra.mxu1 %v1083_v20  ;;  %1116 = vmatpush3.bf16.msra.mxu0 %v1115_v23 }
 0x109   :  { %1118 = vmatprep.subr.bf16.mxu1 %v1117_v60 }
 0x154   :  { %v147_v24 = vpop.permute.xlu1 %146  ;;  %v139_v25 = vpop.permute.xlu0 %138 }
 0x155   :  { %149 = vst.msk [vmem:[#allocation2 + $0x18] sm:$0xf] %vm135_vm1, %v147_v24  ;;  %141 = vst.msk [vmem:[#allocation2 + $0x8] sm:$0xf] %vm135_vm1, %v139_v25 }
 0x158   :  { %v153_v26 = vpop.permute.xlu1 %152  ;;  %v143_v27 = vpop.permute.xlu0 %142 }
 0x159   :  { %155 = vst.msk [vmem:[#allocation2 + $0x28] sm:$0xf] %vm135_vm1, %v153_v26  ;;  %145 = vst.msk [vmem:[#allocation2 + $0x10] sm:$0xf] %vm135_vm1, %v143_v27 }
 0x15c   :  { %v157_v28 = vld [vmem:[#allocation2 + $0x8] sm:$0xff]  ;;  %v159_v30 = vld [vmem:[#allocation2 + $0x18] sm:$0xff] }
 0x15d   :  { %873 = vmatmul.mubr.msk.f32.gmra.mrb[2].mxu1 %vm54_vm0, %v157_v28  ;;  %879 = vmatmul.mubr.msk.f32.gmra.mrb[4].mxu0 %vm54_vm0, %v157_v28 }
 0x15e   :  { %309 = vmatprep.mubr.f32.mxu1 %v1164_v7  ;;  %410 = vmatprep.mubr.f32.mxu0 %v1164_v7 }
 0x160   :  { %v158_v29 = vld [vmem:[#allocation2 + $0x10] sm:$0xff]  ;;  %v161_v32 = vld [vmem:[#allocation2 + $0x28] sm:$0xff] }
 0x161   :  { %874 = vmatmul.mubr.msk.f32.gmra.mrb[4].mxu1 %vm54_vm0, %v158_v29  ;;  %880 = vmatmul.mubr.msk.f32.gmra.mrb[6].mxu0 %vm54_vm0, %v158_v29 }
 0x162   :  { %315 = vmatprep.mubr.f32.mxu1 %v1164_v7  ;;  %416 = vmatprep.mubr.f32.mxu0 %v1164_v7 }
 0x165   :  { %875 = vmatmul.mubr.msk.f32.gmra.mrb[6].mxu1 %vm54_vm0, %v159_v30  ;;  %881 = vmatmul.mubr.msk.f32.gmra.mrb[8].mxu0 %vm54_vm0, %v159_v30 }
 0x166   :  { %321 = vmatprep.mubr.f32.mxu1 %v1164_v7  ;;  %422 = vmatprep.mubr.f32.mxu0 %v1164_v7 }
 0x169   :  { %876 = vmatmul.mubr.msk.f32.gmra.mrb[8].mxu1 %vm54_vm0, %v160_v31  ;;  %882 = vmatmul.mubr.msk.f32.gmra.mrb[10].mxu0 %vm54_vm0, %v160_v31 }
 0x16a   :  { %327 = vmatprep.mubr.f32.mxu1 %v1164_v7  ;;  %428 = vmatprep.mubr.f32.mxu0 %v1164_v7  ;;  %v1535_v7 = vrot.slane %v182_v36, %v181_v33 }
 0x16d   :  { %877 = vmatmul.mubr.msk.f32.gmra.mrb[10].mxu1 %vm54_vm0, %v161_v32  ;;  %883 = vmatmul.mubr.msk.f32.gmra.mrb[12].mxu0 %vm54_vm0, %v161_v32 }
 0x1bd   :  { %v299_v45 = vpop.f32.mrb[0].mxu1  ;;  %v400_v46 = vpop.f32.mrb[2].mxu0 }
 0x1be   :  { %v300_v47 = vadd.f32 %v299_v45, %v1535_v7  ;;  %v401_v48 = vadd.f32 %v400_v46, %v1537_v42  ;;  %v301_v49 = vpop.f32.mrb[1].mxu1  ;;  %v402_v50 = vpop.f32.mrb[3].mxu0 }
 0x1bf   :  { %v302_v51 = vadd.f32 %v301_v49, %v1539_v43  ;;  %v403_v52 = vadd.f32 %v402_v50, %v1541_v44 }
 0x1c0   :  { %v435_v55 = vmax.f32 %v300_v47, 0.0  ;;  %v437_v56 = vmax.f32 %v401_v48, 0.0 }
 0x1c1   :  { %v436_v53 = vmax.f32 %v302_v51, 0.0  ;;  %v438_v54 = vmax.f32 %v403_v52, 0.0 }
 0x1c3   :  { %591 = vmatprep.mubr.f32.mxu1 %v436_v53  ;;  %686 = vmatprep.mubr.f32.mxu0 %v438_v54 }
 0x1c4   :  { %592 = vmatmul.mubr.f32.vlgmr.msra.gmra.mrb[12].mxu1 %v435_v55  ;;  %687 = vmatmul.mubr.f32.vlgmr.msra.gmra.mrb[14].mxu0 %v437_v56 }
 0x1c5   :  { %1120 = vmatpush3.bf16.msra.mxu1 %v1117_v60 }
 0x1c6   :  { %1122 = vmatprep.subr.bf16.mxu1 %v1121_v62 }
 0x1c9   :  { %1124 = vmatpush3.bf16.msra.mxu1 %v1121_v62 }
 0x230   :  { %v305_v63 = vpop.f32.mrb[2].mxu1  ;;  %v406_v0 = vpop.f32.mrb[4].mxu0 }
 0x231   :  { %v306_v1 = vadd.f32 %v305_v63, %v1535_v7  ;;  %v407_v2 = vadd.f32 %v406_v0, %v1537_v42  ;;  %v307_v3 = vpop.f32.mrb[3].mxu1  ;;  %v408_v4 = vpop.f32.mrb[5].mxu0 }
 0x232   :  { %v308_v5 = vadd.f32 %v307_v3, %v1539_v43  ;;  %v409_v6 = vadd.f32 %v408_v4, %v1541_v44  ;;  %v525_v3 = vsub.s32 2, %v1297_v39 }
 0x233   :  { %v439_v12 = vmax.f32 %v306_v1, 0.0  ;;  %v441_v13 = vmax.f32 %v407_v2, 0.0  ;;  %v730_v1 = vld [vmem:[%s1617_s4 + $0x38] sm:$0xff] }
 0x234   :  { %v440_v8 = vmax.f32 %v308_v5, 0.0  ;;  %v442_v9 = vmax.f32 %v409_v6, 0.0  ;;  %v311_v10 = vpop.f32.mrb[4].mxu1  ;;  %v412_v11 = vpop.f32.mrb[6].mxu0  ;;  %v526_v6 = vrot.slane %v1303_v41, %v525_v3 }
 0x235   :  { %v312_v14 = vadd.f32 %v311_v10, %v1535_v7  ;;  %v413_v15 = vadd.f32 %v412_v11, %v1537_v42  ;;  %v313_v16 = vpop.f32.mrb[5].mxu1  ;;  %v414_v17 = vpop.f32.mrb[7].mxu0 }
 0x236   :  { %v314_v18 = vadd.f32 %v313_v16, %v1539_v43  ;;  %v415_v19 = vadd.f32 %v414_v17, %v1541_v44  ;;  %596 = vmatprep.mubr.f32.mxu1 %v440_v8  ;;  %691 = vmatprep.mubr.f32.mxu0 %v442_v9 }
 0x237   :  { %597 = vmatmul.mubr.f32.gmra.mrb[14].mxu1 %v439_v12  ;;  %692 = vmatmul.mubr.f32.gmra.mrb[16].mxu0 %v441_v13  ;;  %v443_v24 = vmax.f32 %v312_v14, 0.0  ;;  %v445_v25 = vmax.f32 %v413_v15, 0.0 }
 0x238   :  { %v444_v20 = vmax.f32 %v314_v18, 0.0  ;;  %v446_v21 = vmax.f32 %v415_v19, 0.0  ;;  %v317_v22 = vpop.f32.mrb[6].mxu1  ;;  %v418_v23 = vpop.f32.mrb[8].mxu0 }
 0x239   :  { %v318_v26 = vadd.f32 %v317_v22, %v1535_v7  ;;  %v419_v27 = vadd.f32 %v418_v23, %v1537_v42  ;;  %v319_v28 = vpop.f32.mrb[7].mxu1  ;;  %v420_v29 = vpop.f32.mrb[9].mxu0 }
 0x23a   :  { %v320_v30 = vadd.f32 %v319_v28, %v1539_v43  ;;  %v421_v31 = vadd.f32 %v420_v29, %v1541_v44  ;;  %601 = vmatprep.mubr.f32.mxu1 %v444_v20  ;;  %696 = vmatprep.mubr.f32.mxu0 %v446_v21 }
 0x23b   :  { %602 = vmatmul.mubr.f32.gmra.mrb[16].mxu1 %v443_v24  ;;  %697 = vmatmul.mubr.f32.gmra.mrb[18].mxu0 %v445_v25  ;;  %v447_v36 = vmax.f32 %v318_v26, 0.0  ;;  %v449_v37 = vmax.f32 %v419_v27, 0.0 }
 0x23c   :  { %v448_v32 = vmax.f32 %v320_v30, 0.0  ;;  %v450_v33 = vmax.f32 %v421_v31, 0.0  ;;  %v323_v34 = vpop.f32.mrb[8].mxu1  ;;  %v424_v35 = vpop.f32.mrb[10].mxu0 }
 0x23d   :  { %v324_v38 = vadd.f32 %v323_v34, %v1535_v7  ;;  %v425_v40 = vadd.f32 %v424_v35, %v1537_v42  ;;  %v325_v45 = vpop.f32.mrb[9].mxu1  ;;  %v426_v46 = vpop.f32.mrb[11].mxu0 }
 0x23e   :  { %v326_v47 = vadd.f32 %v325_v45, %v1539_v43  ;;  %v427_v48 = vadd.f32 %v426_v46, %v1541_v44  ;;  %606 = vmatprep.mubr.f32.mxu1 %v448_v32  ;;  %701 = vmatprep.mubr.f32.mxu0 %v450_v33 }
 0x23f   :  { %607 = vmatmul.mubr.f32.gmra.mrb[18].mxu1 %v447_v36  ;;  %702 = vmatmul.mubr.f32.gmra.mrb[20].mxu0 %v449_v37  ;;  %v451_v53 = vmax.f32 %v324_v38, 0.0  ;;  %v453_v54 = vmax.f32 %v425_v40, 0.0 }
 0x240   :  { %v452_v49 = vmax.f32 %v326_v47, 0.0  ;;  %v454_v50 = vmax.f32 %v427_v48, 0.0  ;;  %v329_v51 = vpop.f32.mrb[10].mxu1  ;;  %v430_v52 = vpop.f32.mrb[12].mxu0 }
 0x241   :  { %v330_v55 = vadd.f32 %v329_v51, %v1535_v7  ;;  %v431_v56 = vadd.f32 %v430_v52, %v1537_v42  ;;  %v331_v57 = vpop.f32.mrb[11].mxu1  ;;  %v432_v58 = vpop.f32.mrb[13].mxu0  ;;  %v727_v7 = vld [vmem:[%s1617_s4 + $0x20] sm:$0xff]  ;;  %v728_v42 = vld [vmem:[%s1617_s4 + $0x28] sm:$0xff] }
 0x242   :  { %v332_v59 = vadd.f32 %v331_v57, %v1539_v43  ;;  %v433_v60 = vadd.f32 %v432_v58, %v1541_v44  ;;  %611 = vmatprep.mubr.f32.mxu1 %v452_v49  ;;  %706 = vmatprep.mubr.f32.mxu0 %v454_v50  ;;  %v1125_v43 = vpack.c.bf16 %v728_v42, %v727_v7  ;;  %v729_v44 = vld [vmem:[%s1617_s4 + $0x30] sm:$0xff]  ;;  %v733_v7 = vsub.s32 3, %v1297_v39  ;;  %s1168_s4 = smov [#allocation3]  }
 0x243   :  { %612 = vmatmul.mubr.f32.gmra.mrb[20].mxu1 %v451_v53  ;;  %707 = vmatmul.mubr.f32.gmra.mrb[22].mxu0 %v453_v54  ;;  %v455_v63 = vmax.f32 %v330_v55, 0.0  ;;  %v457_v0 = vmax.f32 %v431_v56, 0.0  ;;  %v1129_v2 = vpack.c.bf16 %v730_v1, %v729_v44  ;;  %s860_s8 = sshll.u32 %s1168_s4, 4  ;;  %s861_s8 = int_to_ptr.vmem [resolvable:$true] %s860_s8 }
 0x244   :  { %v456_v61 = vmax.f32 %v332_v59, 0.0  ;;  %v458_v62 = vmax.f32 %v433_v60, 0.0  ;;  %1126 = vmatprep.subr.bf16.mxu1 %v1125_v43  ;;  %v734_v42 = vrot.slane %v1303_v41, %v733_v7  ;;  %s1140_s9 = scalar_lea.vmem %s861_s8, 768  ;;  %p1145_p1 = scmp.lt.s32.totalorder %s861_s8, %s861_s8 }
 0x245   :  { %1128 = vmatpush3.bf16.msra.mxu1 %v1125_v43  ;;  %p1141_p0 = scmp.ne.s32.totalorder %s861_s8, %s1140_s9  ;;  %p1146_p2 = scmp.lt.s32.totalorder %s1140_s9, %s1140_s9 }
 0x246   :  { %616 = vmatprep.mubr.f32.mxu1 %v456_v61  ;;  %711 = vmatprep.mubr.f32.mxu0 %v458_v62 }
 0x247   :  { %617 = vmatmul.mubr.f32.gmra.mrb[22].mxu1 %v455_v63  ;;  %712 = vmatmul.mubr.f32.gmra.mrb[24].mxu0 %v457_v0  ;;  %p1147_p3 = por %p1146_p2, %p1145_p1 }
 0x248   :  { %1130 = vmatprep.subr.bf16.mxu1 %v1129_v2 }
 0x249   :  { %1132 = vmatpush3.bf16.msra.mxu1 %v1129_v2  ;;  %p1148_p4 = pnand %p1147_p3, %p1141_p0 }
 0x297   :  { %v922_v4 = vpop.f32.mrb[12].mxu1  ;;  %v972_v5 = vpop.f32.mrb[14].mxu0 }
 0x298   :  { %v923_v8 = vpop.f32.mrb[13].mxu1  ;;  %v973_v9 = vpop.f32.mrb[15].mxu0 }
 0x299   :  { %v924_v10 = vadd.f32 %v923_v8, %v922_v4  ;;  %v974_v11 = vadd.f32 %v973_v9, %v972_v5 }
 0x29b   :  { %v594_v12 = vadd.f32 %v924_v10, %v526_v6 }
 0x29d   :  { %v689_v13 = vadd.f32 %v974_v11, %v594_v12 }
 0x29f   :  { %v717_v14 = vmax.f32 %v689_v13, 0.0 }
 0x2a1   :  { %1020 = vmatprep.mubr.msk.f32.mxu1 %vm735_vm2, %v717_v14 }
 0x30a   :  { %v925_v15 = vpop.f32.mrb[14].mxu1  ;;  %v975_v16 = vpop.f32.mrb[16].mxu0 }
 0x30b   :  { %v926_v17 = vpop.f32.mrb[15].mxu1  ;;  %v976_v18 = vpop.f32.mrb[17].mxu0 }
 0x30c   :  { %v927_v19 = vadd.f32 %v926_v17, %v925_v15  ;;  %v977_v20 = vadd.f32 %v976_v18, %v975_v16 }
 0x30e   :  { %v599_v21 = vadd.f32 %v927_v19, %v526_v6  ;;  %v928_v22 = vpop.f32.mrb[16].mxu1  ;;  %v978_v23 = vpop.f32.mrb[18].mxu0 }
 0x30f   :  { %v929_v24 = vpop.f32.mrb[17].mxu1  ;;  %v979_v25 = vpop.f32.mrb[19].mxu0 }
 0x310   :  { %v694_v26 = vadd.f32 %v977_v20, %v599_v21  ;;  %v930_v27 = vadd.f32 %v929_v24, %v928_v22  ;;  %v980_v28 = vadd.f32 %v979_v25, %v978_v23 }
 0x312   :  { %v718_v29 = vmax.f32 %v694_v26, 0.0  ;;  %v604_v30 = vadd.f32 %v930_v27, %v526_v6  ;;  %v931_v31 = vpop.f32.mrb[18].mxu1  ;;  %v981_v32 = vpop.f32.mrb[20].mxu0 }
 0x313   :  { %v932_v33 = vpop.f32.mrb[19].mxu1  ;;  %v982_v34 = vpop.f32.mrb[21].mxu0 }
 0x314   :  { %v699_v35 = vadd.f32 %v980_v28, %v604_v30  ;;  %v933_v36 = vadd.f32 %v932_v33, %v931_v31  ;;  %v983_v37 = vadd.f32 %v982_v34, %v981_v32  ;;  %1021 = vmatmul.mubr.msk.f32.vlgmr.msra.gmra.mrb[24].mxu1 %vm735_vm2, %v718_v29 }
 0x316   :  { %v719_v38 = vmax.f32 %v699_v35, 0.0  ;;  %v609_v40 = vadd.f32 %v933_v36, %v526_v6  ;;  %v934_v45 = vpop.f32.mrb[20].mxu1  ;;  %v984_v46 = vpop.f32.mrb[22].mxu0 }
 0x317   :  { %v935_v47 = vpop.f32.mrb[21].mxu1  ;;  %v985_v48 = vpop.f32.mrb[23].mxu0 }
 0x318   :  { %v704_v49 = vadd.f32 %v983_v37, %v609_v40  ;;  %v936_v50 = vadd.f32 %v935_v47, %v934_v45  ;;  %v986_v51 = vadd.f32 %v985_v48, %v984_v46  ;;  %1023 = vmatprep.mubr.msk.f32.mxu1 %vm735_vm2, %v719_v38 }
 0x31a   :  { %v720_v52 = vmax.f32 %v704_v49, 0.0  ;;  %v614_v53 = vadd.f32 %v936_v50, %v526_v6  ;;  %v937_v54 = vpop.f32.mrb[22].mxu1  ;;  %v987_v55 = vpop.f32.mrb[24].mxu0 }
 0x31b   :  { %v938_v56 = vpop.f32.mrb[23].mxu1  ;;  %v988_v57 = vpop.f32.mrb[25].mxu0 }
 0x31c   :  { %v709_v58 = vadd.f32 %v986_v51, %v614_v53  ;;  %v939_v59 = vadd.f32 %v938_v56, %v937_v54  ;;  %v989_v60 = vadd.f32 %v988_v57, %v987_v55  ;;  %1024 = vmatmul.mubr.msk.f32.gmra.mrb[26].mxu1 %vm735_vm2, %v720_v52 }
 0x31e   :  { %v721_v61 = vmax.f32 %v709_v58, 0.0  ;;  %v619_v62 = vadd.f32 %v939_v59, %v526_v6 }
 0x320   :  { %v714_v63 = vadd.f32 %v989_v60, %v619_v62  ;;  %1026 = vmatprep.mubr.msk.f32.mxu1 %vm735_vm2, %v721_v61 }
 0x322   :  { %v722_v0 = vmax.f32 %v714_v63, 0.0 }
 0x324   :  { %1027 = vmatmul.mubr.msk.f32.gmra.mrb[28].mxu1 %vm735_vm2, %v722_v0 }
 0x3e7   :  { %v1022_v43 = vpop.f32.mrb[24].mxu1 }
 0x3e8   :  { %v826_v44 = vadd.f32 %v1022_v43, %v734_v42  ;;  %v820_v1 = vpop.f32.mrb[25].mxu1 }
 0x3e9   :  { %v821_v2 = vadd.f32 %v820_v1, %v734_v42 }
 0x3ea   :  { %850 = vst [vmem:[#allocation3 + $0x8] sm:$0xff] %v826_v44 }
 0x3eb   :  { %849 = vst [vmem:[#allocation3] sm:$0xff] %v821_v2 }
 0x3ef   :  { %v1025_v3 = vpop.f32.mrb[26].mxu1 }
 0x3f0   :  { %v836_v4 = vadd.f32 %v1025_v3, %v734_v42  ;;  %v830_v5 = vpop.f32.mrb[27].mxu1 }
 0x3f1   :  { %v831_v6 = vadd.f32 %v830_v5, %v734_v42 }
 0x3f2   :  { %852 = vst [vmem:[#allocation3 + $0x18] sm:$0xff] %v836_v4 }
 0x3f3   :  { %851 = vst [vmem:[#allocation3 + $0x10] sm:$0xff] %v831_v6 }
 0x3f7   :  { %v1028_v8 = vpop.f32.mrb[28].mxu1 }
 0x3f8   :  { %v846_v9 = vadd.f32 %v1028_v8, %v734_v42  ;;  %v840_v10 = vpop.f32.mrb[29].mxu1 }
 0x3f9   :  { %v841_v39 = vadd.f32 %v840_v10, %v734_v42 }
 0x3fa   :  { %854 = vst [vmem:[#allocation3 + $0x28] sm:$0xff] %v846_v9 }
 0x3fb   :  { %853 = vst [vmem:[#allocation3 + $0x20] sm:$0xff] %v841_v39 }
 0x3fc   :  { %1151 = shalt.err (!%p1148_p4)
}
 0x3fd   :  { %s1152_s12 = scalar_lea.hbm %s1619_s6, 768 }
 0x3fe   :  { %p1153_p5 = scmp.ne.s32.totalorder %s1619_s6, %s1152_s12  ;;  %p1156_p6 = scmp.lt.u32.totalorder %s1152_s12, %s1619_s6 }
 0x400   :  { %p1158_p7 = pnand %p1156_p6, %p1153_p5 }
 0x402   :  { %1161 = shalt.err (!%p1158_p7)
}
 0x403   :  { %s1169_s17 = smov 128   ;;  %s1170_s1 = smov 8  }
 0x404   :  { %866 = dma.vmem_to_hbm [thread:$0]  %s861_s8, 768, %s1619_s6, [#allocation4], %s1169_s17, %s1169_s17, %s1170_s1  }
 0x405   :  { %1162 = dma.done.wait [#allocation4], 768  }
 0x406   :  { %1163 = vsyncadd [#allocation4], 4294966528 }
 0x407   :  { %870 = vsyncpa [#allocation4], 1 }

</bundles_post_ra>
